<compile_context>
chip_gen: v6e
topology: v6e:2x2x1
jax: 0.10.0
libtpu: 0.0.40
codegen_flags: <defaults>
</compile_context>

<pallas_src>
import functools

import jax
import jax.numpy as jnp
from jax import lax
from jax.experimental import pallas as pl
from jax.experimental.pallas import tpu as pltpu

_EPS = 1e-5  # PyTorch BatchNorm1d default


def _round_up(n, m):
    return (n + m - 1) // m * m


def _pow2_le(n):
    p = 1
    while p * 2 <= n:
        p *= 2
    return p


def _detect_vmem_capacity():
    try:
        return int(pltpu.get_tpu_info().vmem_capacity_bytes)
    except Exception:
        return 64 * 1024 * 1024  # conservative (v7x per-core VMEM)


_VMEM_CAP = _detect_vmem_capacity()
_BIG_VMEM = _VMEM_CAP >= 100 * 1024 * 1024            # v5e / v6e (128 MiB)
_VMEM_LIMIT = max(32 * 1024 * 1024,
                  min(96 * 1024 * 1024, (_VMEM_CAP * 3) // 4))
_FUSE_BYTES = (8 if _BIG_VMEM else 2) * 1024 * 1024   # whole-x-resident path
_TILE_BYTES = (6 if _BIG_VMEM else 2) * 1024 * 1024   # per x-tile buffer


# ---------------------------------------------------------------------------
# Fused path: whole (padded) x resident in VMEM, one kernel, one HBM pass.
# ---------------------------------------------------------------------------
def _fused_kernel(x_ref, g_ref, bta_ref, w1t_ref, b1_ref, w2_ref, b2_ref,
                  o_ref, *, batch, pad_rows):
    x = x_ref[...].astype(jnp.float32)                        # [Bp, D]
    inv_b = jnp.float32(1.0 / batch)
    mean = jnp.sum(x, axis=0, keepdims=True) * inv_b          # [1, D]
    xc = x - mean
    ssq = jnp.sum(xc * xc, axis=0, keepdims=True)             # [1, D]
    # zero-padded rows each contribute mean^2 to ssq; remove them exactly.
    var = (ssq - jnp.float32(pad_rows) * mean * mean) * inv_b
    scale = g_ref[...] * lax.rsqrt(var + _EPS)                # [1, D]
    y = xc * scale + bta_ref[...]                             # BN output
    h = jnp.dot(y, w1t_ref[...], preferred_element_type=jnp.float32)  # [Bp,Hp]
    h = jnp.maximum(h + b1_ref[...], 0.0)
    out = jnp.sum(h * w2_ref[...], axis=-1, keepdims=True) + b2_ref[0, 0]
    o_ref[...] = out.astype(o_ref.dtype)


# ---------------------------------------------------------------------------
# Stage 1 (tiled path): shifted partial sums, ("parallel","arbitrary") grid.
# ---------------------------------------------------------------------------
def _stats_kernel(x_ref, c_ref, psum_ref, psq_ref):
    i = pl.program_id(1)

    @pl.when(i == 0)
    def _init():
        psum_ref[...] = jnp.zeros_like(psum_ref)
        psq_ref[...] = jnp.zeros_like(psq_ref)

    # Shifted rows (first-row shift) -> no catastrophic cancellation later.
    xc = x_ref[...].astype(jnp.float32) - c_ref[...]          # [TBs, W]
    rows, width = xc.shape
    xg = xc.reshape(rows // 8, 8, width)                      # layout-free regroup
    # Pure VPU accumulation into [8, W] sublane accumulators (no XLU per step).
    psum_ref[...] += jnp.sum(xg, axis=0, keepdims=True)       # [1, 8, W]
    psq_ref[...] += jnp.sum(xg * xg, axis=0, keepdims=True)


# ---------------------------------------------------------------------------
# Stage 2 (tiled path): folded Linear + ReLU + Linear(50->1), batch-parallel.
# ---------------------------------------------------------------------------
def _fwd_kernel(x_ref, w1t_ref, b1_ref, w2_ref, b2_ref, o_ref):
    h = jnp.dot(x_ref[...].astype(jnp.float32), w1t_ref[...],
                preferred_element_type=jnp.float32)           # [TB, Hp] (MXU)
    h = jnp.maximum(h + b1_ref[...], 0.0)                     # bias + ReLU (VPU)
    # Hp -> 1 projection as multiply + lane reduce (keeps the MXU free).
    out = jnp.sum(h * w2_ref[...], axis=-1, keepdims=True) + b2_ref[0, 0]
    o_ref[...] = out.astype(o_ref.dtype)


# ---------------------------------------------------------------------------
# Wrapper
# ---------------------------------------------------------------------------
@functools.partial(jax.jit, static_argnames=("force_two_stage",))
def nn_forward(x, gamma, beta, w1, b1, w2, b2, *, force_two_stage=False):
    """Forward of BatchNorm1d(D) -> Linear(D,50) -> ReLU -> Linear(50,1).

    PyTorch layouts: gamma/beta [D], w1 [50, D], b1 [50], w2 [1, 50], b2 [1].
    Returns float32 [B, 1] (training-mode BN statistics).
    """
    # TODO(synk): running_mean/running_var buffer updates are not emitted
    # (pure forward only); the returned activations are unaffected.
    x = x.astype(jnp.float32)
    B, D = x.shape
    H = w1.shape[0]
    Hp = _round_up(H, 8)            # hidden pad: multiple of 8 is enough
    Dl = _round_up(D, 128)          # lane-padded width of one x row in VMEM

    # Matmul-friendly parameter layouts (transpose the small weight once).
    w1t = jnp.zeros((D, Hp), jnp.float32).at[:, :H].set(w1.astype(jnp.float32).T)
    b1r = jnp.zeros((1, Hp), jnp.float32).at[0, :H].set(b1.astype(jnp.float32))
    w2r = jnp.zeros((1, Hp), jnp.float32).at[0, :H].set(
        w2.reshape(H).astype(jnp.float32))
    b2s = jnp.asarray(b2, jnp.float32).reshape(1, 1)
    gr = gamma.reshape(1, D).astype(jnp.float32)
    br = beta.reshape(1, D).astype(jnp.float32)

    x_vmem_bytes = _round_up(B, 8) * Dl * 4

    # ---------------- fused path: one kernel, one HBM pass over x -----------
    if (not force_two_stage) and x_vmem_bytes <= _FUSE_BYTES:
        Bp = _round_up(B, 8)
        xp = x if Bp == B else jnp.zeros((Bp, D), jnp.float32).at[:B].set(x)
        out = pl.pallas_call(
            functools.partial(_fused_kernel, batch=B, pad_rows=Bp - B),
            out_shape=jax.ShapeDtypeStruct((Bp, 1), jnp.float32),
            grid=(1,),
            in_specs=[
                pl.BlockSpec((Bp, D), lambda i: (0, 0)),
                pl.BlockSpec((1, D), lambda i: (0, 0)),
                pl.BlockSpec((1, D), lambda i: (0, 0)),
                pl.BlockSpec((D, Hp), lambda i: (0, 0)),
                pl.BlockSpec((1, Hp), lambda i: (0, 0)),
                pl.BlockSpec((1, Hp), lambda i: (0, 0)),
                pl.BlockSpec(memory_space=pltpu.MemorySpace.SMEM),
            ],
            out_specs=pl.BlockSpec((Bp, 1), lambda i: (0, 0)),
            compiler_params=pltpu.CompilerParams(
                dimension_semantics=("arbitrary",),
                vmem_limit_bytes=_VMEM_LIMIT),
        )(xp, gr, br, w1t, b1r, w2r, b2s)
        return out[:B]

    # ---------------- two-stage path for large x -----------------------------
    # Batch tile sized from the per-buffer VMEM budget against the lane-padded
    # row width Dl (not raw D), guarded for very large D.
    TB = (_TILE_BYTES // (4 * Dl)) // 128 * 128
    if TB == 0:
        TB = max(8, (_TILE_BYTES // (4 * Dl)) // 8 * 8)
    nb = -(-B // TB)
    nb2 = _round_up(max(nb, 2), 2)       # even -> 2-way outer split (v7x 2 TCs)
    Bp = nb2 * TB
    xp = x if Bp == B else jnp.zeros((Bp, D), jnp.float32).at[:B].set(x)

    # Lane densification for small D: view x as [Bp/k, k*D] (row-major, exact).
    k = min(16, _pow2_le(128 // D)) if D <= 64 else 1
    if TB % (8 * k) != 0:
        k = 1
    W = k * D
    TBs = TB // k
    x_s = xp.reshape(Bp // k, W)
    c0 = x[0, :]                                    # first-row shift
    c_s = jnp.tile(c0, (k,)).reshape(1, W)
    n_outer = 2
    n_inner = nb2 // 2

    psum, psq = pl.pallas_call(
        _stats_kernel,
        out_shape=(jax.ShapeDtypeStruct((n_outer, 8, W), jnp.float32),
                   jax.ShapeDtypeStruct((n_outer, 8, W), jnp.float32)),
        grid=(n_outer, n_inner),
        in_specs=[
            pl.BlockSpec((TBs, W), lambda o, i, _n=n_inner: (o * _n + i, 0)),
            pl.BlockSpec((1, W), lambda o, i: (0, 0)),
        ],
        out_specs=(
            pl.BlockSpec((1, 8, W), lambda o, i: (o, 0, 0)),
            pl.BlockSpec((1, 8, W), lambda o, i: (o, 0, 0)),
        ),
        compiler_params=pltpu.CompilerParams(
            dimension_semantics=("parallel", "arbitrary"),
            vmem_limit_bytes=_VMEM_LIMIT),
    )(x_s, c_s)

    # Finalize statistics + fold BN into Linear1 in plain XLA (O(D*Hp), tiny).
    S = jnp.sum(psum, axis=(0, 1)).reshape(k, D).sum(axis=0)   # sum(x - c)
    Q = jnp.sum(psq, axis=(0, 1)).reshape(k, D).sum(axis=0)    # sum((x - c)^2)
    n_pad = jnp.float32(Bp - B)
    S = S + n_pad * c0                       # remove zero-pad rows' (0 - c)
    Q = Q - n_pad * c0 * c0                  # remove zero-pad rows' c^2
    inv_b = jnp.float32(1.0 / B)
    dmean = S * inv_b                        # mean - c0 (small -> no cancellation)
    mean = c0 + dmean
    var = jnp.maximum(Q * inv_b - dmean * dmean, 0.0)
    scale = gamma.astype(jnp.float32) * lax.rsqrt(var + _EPS)  # [D]
    shift = beta.astype(jnp.float32) - mean * scale            # [D]
    w1e = w1t * scale[:, None]                                 # [D, Hp]
    b1e = (jnp.dot(shift, w1t) + b1r[0]).reshape(1, Hp)        # [1, Hp]

    out = pl.pallas_call(
        _fwd_kernel,
        out_shape=jax.ShapeDtypeStruct((Bp, 1), jnp.float32),
        grid=(nb2,),
        in_specs=[
            pl.BlockSpec((TB, D), lambda i: (i, 0)),     # x tiles
            pl.BlockSpec((D, Hp), lambda i: (0, 0)),     # folded W1 (resident)
            pl.BlockSpec((1, Hp), lambda i: (0, 0)),     # folded b1
            pl.BlockSpec((1, Hp), lambda i: (0, 0)),     # w2 row
            pl.BlockSpec(memory_space=pltpu.MemorySpace.SMEM),  # b2 scalar
        ],
        out_specs=pl.BlockSpec((TB, 1), lambda i: (i, 0)),
        compiler_params=pltpu.CompilerParams(
            dimension_semantics=("parallel",),
            vmem_limit_bytes=_VMEM_LIMIT),
    )(xp, w1e, b1e, w2r, b2s)
    return out[:B]


def init_params(key, input_size, hidden=50):
    # PyTorch defaults: BN gamma=1, beta=0; Linear U(-1/sqrt(fan_in), +).
    k1, k2, k3, k4 = jax.random.split(key, 4)
    gamma = jnp.ones((input_size,), jnp.float32)
    beta = jnp.zeros((input_size,), jnp.float32)
    bound1 = 1.0 / (input_size ** 0.5)
    w1 = jax.random.uniform(k1, (hidden, input_size), jnp.float32, -bound1, bound1)
    b1 = jax.random.uniform(k2, (hidden,), jnp.float32, -bound1, bound1)
    bound2 = 1.0 / (hidden ** 0.5)
    w2 = jax.random.uniform(k3, (1, hidden), jnp.float32, -bound2, bound2)
    b2 = jax.random.uniform(k4, (1,), jnp.float32, -bound2, bound2)
    return gamma, beta, w1, b1, w2, b2


if __name__ == "__main__":
    key = jax.random.PRNGKey(0)
    kx1, kx2, kp1, kp2 = jax.random.split(key, 4)

    def reference(x, gamma, beta, w1, b1, w2, b2):
        # PyTorch BatchNorm1d training-mode semantics (biased variance).
        mean = jnp.mean(x, axis=0, keepdims=True)
        var = jnp.mean((x - mean) ** 2, axis=0, keepdims=True)
        y = (x - mean) / jnp.sqrt(var + _EPS) * gamma + beta
        h = jnp.maximum(y @ w1.T + b1, 0.0)
        return h @ w2.T + b2

    # Small case -> fused single-kernel path (nonzero mean to stress stats).
    B1, D1 = 8, 32
    x1 = jax.random.normal(kx1, (B1, D1), jnp.float32) * 2.0 + 3.0
    p1 = init_params(kp1, D1)
    o1 = nn_forward(x1, *p1)
    jax.block_until_ready(o1)
    r1 = reference(x1, *p1)
    assert o1.shape == (B1, 1)
    assert jnp.allclose(o1, r1, atol=1e-3, rtol=1e-3), (
        float(jnp.max(jnp.abs(o1 - r1))))

    # Larger case, forced through the tiled two-stage path (stats kernel with
    # lane densification, XLA fold, batch-parallel forward kernel).
    B2, D2 = 512, 50
    x2 = jax.random.normal(kx2, (B2, D2), jnp.float32) * 1.5 + 10.0
    p2 = init_params(kp2, D2)
    o2 = nn_forward(x2, *p2, force_two_stage=True)
    jax.block_until_ready(o2)
    r2 = reference(x2, *p2)
    assert o2.shape == (B2, 1)
    assert jnp.allclose(o2, r2, atol=1e-3, rtol=1e-3), (
        float(jnp.max(jnp.abs(o2 - r2))))

    print("KERNEL_OK")
</pallas_src>

<mosaic_0001>
module attributes {stable_mosaic.version = 11 : i64} {
  func.func @_fused_kernel(%arg0: i32, %arg1: memref<8x32xf32, #tpu.memory_space<vmem>>, %arg2: memref<1x32xf32, #tpu.memory_space<vmem>>, %arg3: memref<1x32xf32, #tpu.memory_space<vmem>>, %arg4: memref<32x56xf32, #tpu.memory_space<vmem>>, %arg5: memref<1x56xf32, #tpu.memory_space<vmem>>, %arg6: memref<1x56xf32, #tpu.memory_space<vmem>>, %arg7: memref<1x1xf32, #tpu.memory_space<smem>>, %arg8: memref<8x1xf32, #tpu.memory_space<vmem>>) attributes {dimension_semantics = [#tpu.dimension_semantics<arbitrary>], iteration_bounds = array<i64: 1>, scalar_prefetch = 0 : i64, scratch_operands = 0 : i64, tpu.core_type = #tpu.core_type<tc>, window_params = [{pipeline_mode = #tpu.pipeline_mode<synchronous>, transform_indices = @transform_0, window_bounds = array<i64: 8, 32>}, {pipeline_mode = #tpu.pipeline_mode<synchronous>, transform_indices = @transform_1, window_bounds = array<i64: 1, 32>}, {pipeline_mode = #tpu.pipeline_mode<synchronous>, transform_indices = @transform_2, window_bounds = array<i64: 1, 32>}, {pipeline_mode = #tpu.pipeline_mode<synchronous>, transform_indices = @transform_3, window_bounds = array<i64: 32, 56>}, {pipeline_mode = #tpu.pipeline_mode<synchronous>, transform_indices = @transform_4, window_bounds = array<i64: 1, 56>}, {pipeline_mode = #tpu.pipeline_mode<synchronous>, transform_indices = @transform_5, window_bounds = array<i64: 1, 56>}, {transform_indices = @transform_6, window_bounds = array<i64: 1, 1>}, {pipeline_mode = #tpu.pipeline_mode<synchronous>, transform_indices = @transform_7, window_bounds = array<i64: 8, 1>}]} {
    %c0 = arith.constant 0 : index
    %c0_0 = arith.constant 0 : index
    %0 = vector.load %arg1[%c0, %c0_0] : memref<8x32xf32, #tpu.memory_space<vmem>>, vector<8x32xf32>
    %cst = arith.constant dense<0.000000e+00> : vector<32xf32>
    %1 = vector.multi_reduction <add>, %0, %cst [0] : vector<8x32xf32> to vector<32xf32>
    %2 = vector.shape_cast %1 : vector<32xf32> to vector<1x32xf32>
    %cst_1 = arith.constant 1.250000e-01 : f32
    %3 = vector.broadcast %cst_1 : f32 to vector<1x32xf32>
    %4 = arith.mulf %2, %3 : vector<1x32xf32>
    %5 = vector.broadcast %4 : vector<1x32xf32> to vector<8x32xf32>
    %6 = arith.subf %0, %5 : vector<8x32xf32>
    %7 = arith.mulf %6, %6 : vector<8x32xf32>
    %cst_2 = arith.constant dense<0.000000e+00> : vector<32xf32>
    %8 = vector.multi_reduction <add>, %7, %cst_2 [0] : vector<8x32xf32> to vector<32xf32>
    %9 = vector.shape_cast %8 : vector<32xf32> to vector<1x32xf32>
    %cst_3 = arith.constant 0.000000e+00 : f32
    %10 = vector.broadcast %cst_3 : f32 to vector<1x32xf32>
    %11 = arith.mulf %10, %4 : vector<1x32xf32>
    %12 = arith.mulf %11, %4 : vector<1x32xf32>
    %13 = arith.subf %9, %12 : vector<1x32xf32>
    %cst_4 = arith.constant 1.250000e-01 : f32
    %14 = vector.broadcast %cst_4 : f32 to vector<1x32xf32>
    %15 = arith.mulf %13, %14 : vector<1x32xf32>
    %c0_5 = arith.constant 0 : index
    %c0_6 = arith.constant 0 : index
    %16 = vector.load %arg2[%c0_5, %c0_6] : memref<1x32xf32, #tpu.memory_space<vmem>>, vector<1x32xf32>
    %cst_7 = arith.constant 9.99999974E-6 : f32
    %17 = vector.broadcast %cst_7 : f32 to vector<1x32xf32>
    %18 = arith.addf %15, %17 : vector<1x32xf32>
    %19 = math.rsqrt %18 : vector<1x32xf32>
    %20 = arith.mulf %16, %19 : vector<1x32xf32>
    %21 = vector.broadcast %20 : vector<1x32xf32> to vector<8x32xf32>
    %22 = arith.mulf %6, %21 : vector<8x32xf32>
    %c0_8 = arith.constant 0 : index
    %c0_9 = arith.constant 0 : index
    %23 = vector.load %arg3[%c0_8, %c0_9] : memref<1x32xf32, #tpu.memory_space<vmem>>, vector<1x32xf32>
    %24 = vector.broadcast %23 : vector<1x32xf32> to vector<8x32xf32>
    %25 = arith.addf %22, %24 : vector<8x32xf32>
    %c0_10 = arith.constant 0 : index
    %c0_11 = arith.constant 0 : index
    %26 = vector.load %arg4[%c0_10, %c0_11] : memref<32x56xf32, #tpu.memory_space<vmem>>, vector<32x56xf32>
    %cst_12 = arith.constant dense<0.000000e+00> : vector<8x56xf32>
    %27 = tpu.matmul %25, %26, %cst_12 {dimension_numbers = #tpu.dot_dimension_numbers<[1], [0], [0], [1], [0, 0, 1, 1], [], []>} : vector<8x32xf32>, vector<32x56xf32>, vector<8x56xf32> -> vector<8x56xf32>
    %c0_13 = arith.constant 0 : index
    %c0_14 = arith.constant 0 : index
    %28 = vector.load %arg5[%c0_13, %c0_14] : memref<1x56xf32, #tpu.memory_space<vmem>>, vector<1x56xf32>
    %29 = vector.broadcast %28 : vector<1x56xf32> to vector<8x56xf32>
    %30 = arith.addf %27, %29 : vector<8x56xf32>
    %cst_15 = arith.constant 0.000000e+00 : f32
    %31 = vector.broadcast %cst_15 : f32 to vector<8x56xf32>
    %32 = arith.maximumf %30, %31 : vector<8x56xf32>
    %c0_16 = arith.constant 0 : index
    %c0_17 = arith.constant 0 : index
    %33 = vector.load %arg6[%c0_16, %c0_17] : memref<1x56xf32, #tpu.memory_space<vmem>>, vector<1x56xf32>
    %34 = vector.broadcast %33 : vector<1x56xf32> to vector<8x56xf32>
    %35 = arith.mulf %32, %34 : vector<8x56xf32>
    %cst_18 = arith.constant dense<0.000000e+00> : vector<8xf32>
    %36 = vector.multi_reduction <add>, %35, %cst_18 [1] : vector<8x56xf32> to vector<8xf32>
    %37 = vector.shape_cast %36 : vector<8xf32> to vector<8x1xf32>
    %c0_19 = arith.constant 0 : index
    %c0_20 = arith.constant 0 : index
    %38 = memref.load %arg7[%c0_19, %c0_20] : memref<1x1xf32, #tpu.memory_space<smem>>
    %39 = vector.broadcast %38 : f32 to vector<8x1xf32>
    %40 = arith.addf %37, %39 : vector<8x1xf32>
    %c0_21 = arith.constant 0 : index
    %c0_22 = arith.constant 0 : index
    %41 = vector.load %arg8[%c0_21, %c0_22] : memref<8x1xf32, #tpu.memory_space<vmem>>, vector<8x1xf32>
    tpu.vector_store %arg8[%c0_21, %c0_22], %40 {strides = array<i32>} : memref<8x1xf32, #tpu.memory_space<vmem>>, vector<8x1xf32>,
    return
  }
  func.func @transform_0(%arg0: i32) -> (i32, i32) {
    %c0_i32 = arith.constant 0 : i32
    %c0_i32_0 = arith.constant 0 : i32
    %c0_i32_1 = arith.constant 0 : i32
    return %c0_i32, %c0_i32_0 : i32, i32
  }
  func.func @transform_1(%arg0: i32) -> (i32, i32) {
    %c0_i32 = arith.constant 0 : i32
    %c0_i32_0 = arith.constant 0 : i32
    %c0_i32_1 = arith.constant 0 : i32
    return %c0_i32, %c0_i32_0 : i32, i32
  }
  func.func @transform_2(%arg0: i32) -> (i32, i32) {
    %c0_i32 = arith.constant 0 : i32
    %c0_i32_0 = arith.constant 0 : i32
    %c0_i32_1 = arith.constant 0 : i32
    return %c0_i32, %c0_i32_0 : i32, i32
  }
  func.func @transform_3(%arg0: i32) -> (i32, i32) {
    %c0_i32 = arith.constant 0 : i32
    %c0_i32_0 = arith.constant 0 : i32
    %c0_i32_1 = arith.constant 0 : i32
    return %c0_i32, %c0_i32_0 : i32, i32
  }
  func.func @transform_4(%arg0: i32) -> (i32, i32) {
    %c0_i32 = arith.constant 0 : i32
    %c0_i32_0 = arith.constant 0 : i32
    %c0_i32_1 = arith.constant 0 : i32
    return %c0_i32, %c0_i32_0 : i32, i32
  }
  func.func @transform_5(%arg0: i32) -> (i32, i32) {
    %c0_i32 = arith.constant 0 : i32
    %c0_i32_0 = arith.constant 0 : i32
    %c0_i32_1 = arith.constant 0 : i32
    return %c0_i32, %c0_i32_0 : i32, i32
  }
  func.func @transform_6(%arg0: i32) -> (i32, i32) {
    %c0_i32 = arith.constant 0 : i32
    %c0_i32_0 = arith.constant 0 : i32
    %c0_i32_1 = arith.constant 0 : i32
    return %c0_i32, %c0_i32_0 : i32, i32
  }
  func.func @transform_7(%arg0: i32) -> (i32, i32) {
    %c0_i32 = arith.constant 0 : i32
    %c0_i32_0 = arith.constant 0 : i32
    %c0_i32_1 = arith.constant 0 : i32
    return %c0_i32, %c0_i32_0 : i32, i32
  }
}

</mosaic_0001>

<bundles_post_ra>
// kernel: nn_forward.1
= control target key start
LH: loop header
LB: loop body
LE: loop exit
PB: predicated region body
PF: predicated region fallthrough
CT: control target
= control target key end

     0   :  { %vm28_vm0 = vcmask 261120   ;;  %v199_v0 = vmov 0.0   ;;  %vm200_vm1 = vmmov 0   ;;  %v55_v28 = vlaneseq  ;;  %s277_s3 = inlined_call_operand.vmem [shape: f32[32,56], index: 3, kind: input, shape index: {}]   ;;  %s278_s0 = inlined_call_operand.vmem [shape: f32[8,32], index: 0, kind: input, shape index: {}]   ;;  %s279_s1 = inlined_call_operand.vmem [shape: f32[1,32], index: 1, kind: input, shape index: {}]   ;;  %s280_s2 = inlined_call_operand.vmem [shape: f32[1,32], index: 2, kind: input, shape index: {}]   ;;  %s281_s4 = inlined_call_operand.vmem [shape: f32[1,56], index: 4, kind: input, shape index: {}]   ;;  %s282_s5 = inlined_call_operand.vmem [shape: f32[1,56], index: 5, kind: input, shape index: {}]   ;;  %s283_s6 = inlined_call_operand.<no memory space> [shape: f32[1,1], index: 6, kind: input, shape index: {}]   ;;  %s284_s7 = inlined_call_operand.vmem [shape: f32[8,1], index: 7, kind: output, shape index: {}]  }
   0x1   :  { %184 = vmatprep.subr.mxu0 %v199_v0  ;;  %v72_v1 = vld [vmem:[%s277_s3 + $0x18] sm:$0xff]  ;;  %v71_v2 = vld [vmem:[%s277_s3 + $0x10] sm:$0xff]  ;;  %192 = vmatprep.mubr.msk.f32.mxu0 %vm200_vm1, %v199_v0  ;;  %v27_v3 = vld [vmem:[%s278_s0] sm:$0xff]  ;;  %vm162_vm2 = vcmask 457728   ;;  %v167_v46 = vstv %s283_s6  ;;  %vm169_vm3 = vcmask 7168  }
   0x2   :  { %185 = vmatpush3.msra.mxu0 %v72_v1  ;;  %v70_v4 = vld [vmem:[%s277_s3 + $0x8] sm:$0xff]  ;;  %v29_v5 = vsel %vm28_vm0, %v27_v3, 0.0  ;;  %v69_v7 = vld [vmem:[%s277_s3] sm:$0xff]  ;;  %v56_v29 = vshrl.u32 %v55_v28, 7 }
   0x3   :  { %186 = vmatprep.subr.mxu0 %v199_v0  ;;  %v30_v6 = vrot.slane %v29_v5, 4  ;;  %v50_v30 = vld [vmem:[%s279_s1] sm:$0x1] }
   0x4   :  { %187 = vmatpush3.msra.mxu0 %v71_v2  ;;  %v57_v31 = vsub.s32 0, %v56_v29  ;;  %v175_v35 = vld [vmem:[%s280_s2] ss:$0 sm:$0xff] }
   0x5   :  { %188 = vmatprep.subr.mxu0 %v199_v0  ;;  %v31_v8 = vadd.f32 %v30_v6, %v29_v5  ;;  %v176_v38 = vld [vmem:[%s281_s4] ss:$0 sm:$0xff] }
   0x6   :  { %189 = vmatpush3.msra.mxu0 %v70_v4  ;;  %v178_v42 = vld [vmem:[%s282_s5] ss:$0 sm:$0xff] }
   0x7   :  { %190 = vmatprep.subr.mxu0 %v199_v0  ;;  %v32_v9 = vrot.slane %v31_v8, 2 }
   0x8   :  { %191 = vmatpush3.msra.mxu0 %v69_v7 }
   0x9   :  { %v33_v10 = vadd.f32 %v32_v9, %v31_v8 }
   0xb   :  { %v34_v11 = vrot.slane %v33_v10, 1 }
   0xd   :  { %v35_v12 = vadd.f32 %v34_v11, %v33_v10 }
   0xf   :  { %v36_v13 = vmul.f32 0.125, %v35_v12 }
  0x11   :  { %v37_v14 = vsub.f32 %v27_v3, %v36_v13  ;;  %v46_v20 = vmul.f32 0.0, %v36_v13 }
  0x13   :  { %v38_v15 = vmul.f32 %v37_v14, %v37_v14  ;;  %v47_v23 = vmul.f32 %v46_v20, %v36_v13 }
  0x15   :  { %v39_v16 = vsel %vm28_vm0, %v38_v15, 0.0 }
  0x16   :  { %v40_v17 = vrot.slane %v39_v16, 4 }
  0x18   :  { %v41_v18 = vadd.f32 %v40_v17, %v39_v16 }
  0x1a   :  { %v42_v19 = vrot.slane %v41_v18, 2 }
  0x1c   :  { %v43_v21 = vadd.f32 %v42_v19, %v41_v18 }
  0x1e   :  { %v44_v22 = vrot.slane %v43_v21, 1 }
  0x20   :  { %v45_v24 = vadd.f32 %v44_v22, %v43_v21 }
  0x22   :  { %v48_v25 = vsub.f32 %v45_v24, %v47_v23 }
  0x24   :  { %v49_v26 = vmul.f32 0.125, %v48_v25 }
  0x26   :  { %v51_v27 = vadd.f32 1e-05, %v49_v26 }
  0x28   :  { %197 = vrsqrt.f32 %v51_v27 }
  0x35   :  { %v198_v32 = vpop.eup %197 }
  0x36   :  { %v53_v33 = vmul.f32 %v198_v32, %v50_v30 }
  0x38   :  { %v58_v34 = vrot.slane %v53_v33, %v57_v31 }
  0x3a   :  { %v60_v36 = vmul.f32 %v58_v34, %v37_v14 }
  0x3c   :  { %v68_v37 = vadd.f32 %v175_v35, %v60_v36 }
  0x3e   :  { %193 = vmatmul.mubr.msk.f32.vlgmr.msra.gmra.mxu0 %vm28_vm0, %v68_v37 }
  0xfe   :  { %v149_v39 = vpop.f32.mrf.mxu0 }
  0xff   :  { %v150_v40 = vadd.f32 %v176_v38, %v149_v39 }
 0x100   :  { %v194_v41 = vpop.f32.mrf.mxu0 }
 0x101   :  { %v153_v43 = vmax.f32 %v150_v40, 0.0 }
 0x103   :  { %v161_v44 = vmul.f32 %v178_v42, %v153_v43 }
 0x105   :  { %v163_v45 = vsel %vm162_vm2, %v161_v44, 0.0 }
 0x106   :  { %164 = vadd.xlane.f32.xlu0 %v163_v45 }
 0x18f   :  { %v165_v47 = vpop.xlane.xlu0 %164 }
 0x190   :  { %v168_v48 = vadd.f32 %v167_v46, %v165_v47 }
 0x192   :  { %170 = vst.msk [vmem:[%s284_s7] sm:$0xff] %vm169_vm3, %v168_v48 }

</bundles_post_ra>
